<compile_context>
chip_gen: v7x
topology: tpu7x:2x2x1
jax: 0.10.0
libtpu: 0.0.40
codegen_flags: <defaults>
</compile_context>

<pallas_src>
import functools

import jax
import jax.numpy as jnp
from jax.experimental import pallas as pl
from jax.experimental.pallas import tpu as pltpu

LANE = 128
SUBLANE = 8
MAX_BLOCK_ROWS = 4096                    # 4096 * 128 * 4 B = 2 MiB per f32 block
VMEM_LIMIT_BYTES = 32 * 1024 * 1024      # safe on v5e/v6e (128 MiB) and v7x (64 MiB)


def _bce_elem(x, t, logits):
    """Elementwise BCE in float32, matching PyTorch semantics."""
    if logits:
        # Numerically stable BCE-with-logits: max(x,0) - x*t + log(1 + exp(-|x|))
        return jnp.maximum(x, 0.0) - x * t + jnp.log1p(jnp.exp(-jnp.abs(x)))
    else:
        # PyTorch clamps the log terms at -100.
        log_x = jnp.maximum(jnp.log(x), -100.0)
        log_1mx = jnp.maximum(jnp.log1p(-x), -100.0)
        return -(t * log_x + (1.0 - t) * log_1mx)


def _num_tensorcore_splits():
    """2-way grid split only on v7x (2 TCs/chip); 1 on v5e/v6e."""
    try:
        kind = jax.devices()[0].device_kind.lower()
    except Exception:  # pragma: no cover
        return 1
    return 2 if ("v7" in kind or "7x" in kind) else 1


def _reduce_kernel(logits, n_valid, block_elems, steps, mask_needed,
                   x_ref, t_ref, o_ref, acc_ref):
    """Accumulate per-split BCE sums into a (1, LANE) VMEM scratch accumulator."""
    split = pl.program_id(0)
    step = pl.program_id(1)

    @pl.when(step == 0)
    def _init():
        acc_ref[...] = jnp.zeros_like(acc_ref)

    x = x_ref[...].astype(jnp.float32)
    t = t_ref[...].astype(jnp.float32)
    b = _bce_elem(x, t, logits)

    def _accumulate(vals):
        # Sublane-axis reduction of the whole block into one (1, LANE) row:
        # VPU adds down the block + one cheap XLU sublane reduce (slot has slack).
        acc_ref[...] += jnp.sum(vals, axis=0, keepdims=True)

    if mask_needed:
        # Logical (un-clamped) flat offset of this block; covers the <128-elem tail
        # pad, the ragged last block's OOB garbage, and phantom steps of the 2-way
        # split (their base is past n_valid, so everything masks to zero).
        base = (split * steps + step) * block_elems
        needs_mask = base + block_elems > n_valid

        @pl.when(needs_mask)
        def _masked():
            r = jax.lax.broadcasted_iota(jnp.int32, b.shape, 0)
            c = jax.lax.broadcasted_iota(jnp.int32, b.shape, 1)
            gidx = base + r * LANE + c
            _accumulate(jnp.where(gidx < n_valid, b, 0.0))

        @pl.when(jnp.logical_not(needs_mask))
        def _full():
            _accumulate(b)
    else:
        _accumulate(b)

    @pl.when(step == steps - 1)
    def _epilogue():
        # One tiny (1, 1, LANE) partial per split is all that goes back to HBM.
        o_ref[...] = acc_ref[...][None]


def _elemwise_kernel(logits, x_ref, t_ref, o_ref):
    x = x_ref[...].astype(jnp.float32)
    t = t_ref[...].astype(jnp.float32)
    o_ref[...] = _bce_elem(x, t, logits).astype(o_ref.dtype)


def bce_loss(inputs, targets, logits=True, reduce=True):
    """Pallas implementation of BCELoss.forward(inputs, targets)."""
    orig_shape = inputs.shape
    n = int(inputs.size)

    if n == 0:
        # torch.mean of an empty tensor is nan; empty elementwise map otherwise.
        if reduce:
            return jnp.asarray(jnp.nan, dtype=jnp.float32)
        return jnp.zeros(orig_shape, inputs.dtype)

    rows = pl.cdiv(n, LANE)
    n128 = rows * LANE
    pad = n128 - n                      # < 128 elements, only if n % 128 != 0

    # Native-dtype streaming; flatten/reshape are free (contiguous bitcasts).
    x = inputs.reshape(-1)
    t = targets.reshape(-1)
    if pad:
        # TODO(synk): this is the only remaining host-side copy; it fires only when
        # numel is not a multiple of 128, and pads at most 127 elements.
        x = jnp.pad(x, (0, pad))
        t = jnp.pad(t, (0, pad))
    x = x.reshape(rows, LANE)
    t = t.reshape(rows, LANE)

    # Block rows: full array when it fits (always a legal block), else 4096 rows.
    # Blocks need not divide `rows` — the last grid step may be ragged.
    block_rows = rows if rows <= MAX_BLOCK_ROWS else MAX_BLOCK_ROWS
    block_elems = block_rows * LANE
    num_blocks = pl.cdiv(rows, block_rows)

    if reduce:
        n_splits = 2 if (_num_tensorcore_splits() == 2 and num_blocks >= 2) else 1
        steps = pl.cdiv(num_blocks, n_splits)
        # Static: any tail pad, ragged last block, or phantom split step present?
        mask_needed = (n_splits * steps * block_elems) != n

        if n_splits * steps == num_blocks:
            def in_map(s, k):
                return (s * steps + k, 0)
        else:
            def in_map(s, k):
                # Clamp phantom trailing steps (odd block count on the 2-way split)
                # onto the last real block; their contribution masks to zero.
                return (jnp.minimum(s * steps + k, num_blocks - 1), 0)

        kernel = functools.partial(_reduce_kernel, logits, n, block_elems,
                                   steps, mask_needed)

        partials = pl.pallas_call(
            kernel,
            out_shape=jax.ShapeDtypeStruct((n_splits, 1, LANE), jnp.float32),
            grid_spec=pltpu.PrefetchScalarGridSpec(
                num_scalar_prefetch=0,
                grid=(n_splits, steps),
                in_specs=[
                    pl.BlockSpec((block_rows, LANE), in_map),
                    pl.BlockSpec((block_rows, LANE), in_map),
                ],
                out_specs=pl.BlockSpec((1, 1, LANE), lambda s, k: (s, 0, 0)),
                scratch_shapes=[pltpu.VMEM((1, LANE), jnp.float32)],
            ),
            compiler_params=pltpu.CompilerParams(
                dimension_semantics=("parallel", "arbitrary"),
                vmem_limit_bytes=VMEM_LIMIT_BYTES),
        )(x, t)
        # Trivial final reduce: <= n_splits * 128 floats.
        return jnp.sum(partials) * (1.0 / n)
    else:
        kernel = functools.partial(_elemwise_kernel, logits)
        out = pl.pallas_call(
            kernel,
            out_shape=jax.ShapeDtypeStruct((rows, LANE), inputs.dtype),
            grid_spec=pltpu.PrefetchScalarGridSpec(
                num_scalar_prefetch=0,
                grid=(num_blocks,),
                in_specs=[
                    pl.BlockSpec((block_rows, LANE), lambda i: (i, 0)),
                    pl.BlockSpec((block_rows, LANE), lambda i: (i, 0)),
                ],
                out_specs=pl.BlockSpec((block_rows, LANE), lambda i: (i, 0)),
            ),
            compiler_params=pltpu.CompilerParams(
                dimension_semantics=("parallel",),
                vmem_limit_bytes=VMEM_LIMIT_BYTES),
        )(x, t)
        out = out.reshape(-1)
        if pad:
            out = out[:n]
        return out.reshape(orig_shape)


def _reference(inputs, targets, logits=True, reduce=True):
    x = inputs.astype(jnp.float32)
    t = targets.astype(jnp.float32)
    b = _bce_elem(x, t, logits)
    return jnp.mean(b) if reduce else b


if __name__ == "__main__":
    key = jax.random.PRNGKey(0)
    kx, kt = jax.random.split(key)

    x = jax.random.normal(kx, (2, 4, 16, 16), dtype=jnp.float32)             # logits
    t = (jax.random.uniform(kt, (2, 4, 16, 16)) > 0.5).astype(jnp.float32)   # targets

    # logits=True, reduce=True (module defaults): scalar mean BCE-with-logits.
    out = jax.block_until_ready(bce_loss(x, t, logits=True, reduce=True))
    ref = _reference(x, t, logits=True, reduce=True)
    assert jnp.allclose(out, ref, rtol=1e-5, atol=1e-5), (out, ref)

    # reduce=False path: full elementwise BCE map, same shape as inputs.
    out_map = jax.block_until_ready(bce_loss(x, t, logits=True, reduce=False))
    ref_map = _reference(x, t, logits=True, reduce=False)
    assert out_map.shape == x.shape
    assert jnp.allclose(out_map, ref_map, rtol=1e-5, atol=1e-5)

    # logits=False path (probabilities in (0,1)).
    p = jax.nn.sigmoid(x)
    out_p = jax.block_until_ready(bce_loss(p, t, logits=False, reduce=True))
    ref_p = _reference(p, t, logits=False, reduce=True)
    assert jnp.allclose(out_p, ref_p, rtol=1e-5, atol=1e-5)

    # Ragged numel (not a multiple of 128): minimal tail pad + in-kernel iota mask.
    kx2, kt2 = jax.random.split(kt)
    xr = jax.random.normal(kx2, (3, 5, 7, 11), dtype=jnp.float32)
    tr = (jax.random.uniform(kt2, (3, 5, 7, 11)) > 0.5).astype(jnp.float32)
    out_r = jax.block_until_ready(bce_loss(xr, tr, logits=True, reduce=True))
    assert jnp.allclose(out_r, _reference(xr, tr, True, True), rtol=1e-5, atol=1e-5)
    out_rm = jax.block_until_ready(bce_loss(xr, tr, logits=True, reduce=False))
    assert out_rm.shape == xr.shape
    assert jnp.allclose(out_rm, _reference(xr, tr, True, False), rtol=1e-5, atol=1e-5)

    # Multi-block, exactly tiled (no pad, no mask): 8192 rows -> 2 blocks of 4096.
    km1, km2 = jax.random.split(kx2)
    xm = jax.random.normal(km1, (2, 4, 1024, 128), dtype=jnp.float32)
    tm_ = (jax.random.uniform(km2, (2, 4, 1024, 128)) > 0.5).astype(jnp.float32)
    out_m = jax.block_until_ready(bce_loss(xm, tm_, logits=True, reduce=True))
    assert jnp.allclose(out_m, _reference(xm, tm_, True, True), rtol=1e-4, atol=1e-5)

    # Multi-block + ragged last block + tail pad: mask fires only on the final step.
    kr1, kr2 = jax.random.split(km2)
    xg = jax.random.normal(kr1, (3, 1500, 200), dtype=jnp.float32)
    tg = (jax.random.uniform(kr2, (3, 1500, 200)) > 0.5).astype(jnp.float32)
    out_g = jax.block_until_ready(bce_loss(xg, tg, logits=True, reduce=True))
    assert jnp.allclose(out_g, _reference(xg, tg, True, True), rtol=1e-4, atol=1e-5)
    out_gm = jax.block_until_ready(bce_loss(xg, tg, logits=True, reduce=False))
    assert out_gm.shape == xg.shape
    assert jnp.allclose(out_gm, _reference(xg, tg, True, False), rtol=1e-5, atol=1e-5)

    print("KERNEL_OK")
</pallas_src>

<mosaic_0001>
module attributes {stable_mosaic.version = 11 : i64} {
  func.func @_reduce_kernel(%arg0: i32, %arg1: i32, %arg2: memref<16x128xf32, #tpu.memory_space<vmem>>, %arg3: memref<16x128xf32, #tpu.memory_space<vmem>>, %arg4: memref<1x1x128xf32, #tpu.memory_space<vmem>>, %arg5: memref<1x128xf32, #tpu.memory_space<vmem>>) attributes {dimension_semantics = [#tpu.dimension_semantics<parallel>, #tpu.dimension_semantics<arbitrary>], iteration_bounds = array<i64: 1, 1>, scalar_prefetch = 0 : i64, scratch_operands = 1 : i64, tpu.core_type = #tpu.core_type<tc>, window_params = [{transform_indices = @transform_0, window_bounds = array<i64: 16, 128>}, {transform_indices = @transform_1, window_bounds = array<i64: 16, 128>}, {transform_indices = @transform_2, window_bounds = array<i64: 1, 1, 128>}]} {
    %c0_i32 = arith.constant 0 : i32
    %0 = arith.cmpi eq, %arg1, %c0_i32 : i32
    %1 = arith.extui %0 : i1 to i32
    %c0_i32_0 = arith.constant 0 : i32
    %2 = arith.cmpi ne, %1, %c0_i32_0 : i32
    scf.if %2 {
      %cst_12 = arith.constant 0.000000e+00 : f32
      %23 = vector.broadcast %cst_12 : f32 to vector<1x128xf32>
      %c0_13 = arith.constant 0 : index
      %c0_14 = arith.constant 0 : index
      %24 = vector.load %arg5[%c0_13, %c0_14] : memref<1x128xf32, #tpu.memory_space<vmem>>, vector<1x128xf32>
      tpu.vector_store %arg5[%c0_13, %c0_14], %23 {strides = array<i32>} : memref<1x128xf32, #tpu.memory_space<vmem>>, vector<1x128xf32>,
    } else {
    }
    %c0 = arith.constant 0 : index
    %c0_1 = arith.constant 0 : index
    %3 = vector.load %arg2[%c0, %c0_1] : memref<16x128xf32, #tpu.memory_space<vmem>>, vector<16x128xf32>
    %c0_2 = arith.constant 0 : index
    %c0_3 = arith.constant 0 : index
    %4 = vector.load %arg3[%c0_2, %c0_3] : memref<16x128xf32, #tpu.memory_space<vmem>>, vector<16x128xf32>
    %cst = arith.constant 0.000000e+00 : f32
    %5 = vector.broadcast %cst : f32 to vector<16x128xf32>
    %6 = arith.maximumf %3, %5 : vector<16x128xf32>
    %7 = arith.mulf %3, %4 : vector<16x128xf32>
    %8 = arith.subf %6, %7 : vector<16x128xf32>
    %9 = math.absf %3 : vector<16x128xf32>
    %cst_4 = arith.constant 0.000000e+00 : f32
    %10 = vector.broadcast %cst_4 : f32 to vector<16x128xf32>
    %11 = arith.subf %10, %9 : vector<16x128xf32>
    %12 = math.exp %11 : vector<16x128xf32>
    %13 = math.log1p %12 : vector<16x128xf32>
    %14 = arith.addf %8, %13 : vector<16x128xf32>
    %c0_5 = arith.constant 0 : index
    %c0_6 = arith.constant 0 : index
    %15 = vector.load %arg5[%c0_5, %c0_6] : memref<1x128xf32, #tpu.memory_space<vmem>>, vector<1x128xf32>
    %cst_7 = arith.constant dense<0.000000e+00> : vector<128xf32>
    %16 = vector.multi_reduction <add>, %14, %cst_7 [0] : vector<16x128xf32> to vector<128xf32>
    %17 = vector.shape_cast %16 : vector<128xf32> to vector<1x128xf32>
    %18 = arith.addf %15, %17 : vector<1x128xf32>
    %c0_8 = arith.constant 0 : index
    %c0_9 = arith.constant 0 : index
    %19 = vector.load %arg5[%c0_8, %c0_9] : memref<1x128xf32, #tpu.memory_space<vmem>>, vector<1x128xf32>
    tpu.vector_store %arg5[%c0_8, %c0_9], %18 {strides = array<i32>} : memref<1x128xf32, #tpu.memory_space<vmem>>, vector<1x128xf32>,
    %c0_i32_10 = arith.constant 0 : i32
    %20 = arith.cmpi eq, %arg1, %c0_i32_10 : i32
    %21 = arith.extui %20 : i1 to i32
    %c0_i32_11 = arith.constant 0 : i32
    %22 = arith.cmpi ne, %21, %c0_i32_11 : i32
    scf.if %22 {
      %c0_12 = arith.constant 0 : index
      %c0_13 = arith.constant 0 : index
      %23 = vector.load %arg5[%c0_12, %c0_13] : memref<1x128xf32, #tpu.memory_space<vmem>>, vector<1x128xf32>
      %24 = vector.shape_cast %23 : vector<1x128xf32> to vector<1x1x128xf32>
      %c0_14 = arith.constant 0 : index
      %c0_15 = arith.constant 0 : index
      %c0_16 = arith.constant 0 : index
      %25 = vector.load %arg4[%c0_14, %c0_15, %c0_16] : memref<1x1x128xf32, #tpu.memory_space<vmem>>, vector<1x1x128xf32>
      tpu.vector_store %arg4[%c0_14, %c0_15, %c0_16], %24 {strides = array<i32>} : memref<1x1x128xf32, #tpu.memory_space<vmem>>, vector<1x1x128xf32>,
    } else {
    }
    return
  }
  func.func @transform_0(%arg0: i32, %arg1: i32) -> (i32, i32) {
    %c1_i32 = arith.constant 1 : i32
    %0 = arith.muli %arg0, %c1_i32 : i32
    %1 = arith.addi %0, %arg1 : i32
    %c0_i32 = arith.constant 0 : i32
    %c0_i32_0 = arith.constant 0 : i32
    return %1, %c0_i32 : i32, i32
  }
  func.func @transform_1(%arg0: i32, %arg1: i32) -> (i32, i32) {
    %c1_i32 = arith.constant 1 : i32
    %0 = arith.muli %arg0, %c1_i32 : i32
    %1 = arith.addi %0, %arg1 : i32
    %c0_i32 = arith.constant 0 : i32
    %c0_i32_0 = arith.constant 0 : i32
    return %1, %c0_i32 : i32, i32
  }
  func.func @transform_2(%arg0: i32, %arg1: i32) -> (i32, i32, i32) {
    %c0_i32 = arith.constant 0 : i32
    %c0_i32_0 = arith.constant 0 : i32
    %c0_i32_1 = arith.constant 0 : i32
    return %arg0, %c0_i32, %c0_i32_0 : i32, i32, i32
  }
}

</mosaic_0001>

<bundles_post_ra>
// kernel: tpu_custom_call.1
= control target key start
LH: loop header
LB: loop body
LE: loop exit
PB: predicated region body
PF: predicated region fallthrough
CT: control target
= control target key end

     0   :  { %7 = vsyncpa [#allocation4], 0  ;;  %s269_s0 = inlined_call_operand.hbm [shape: f32[16,128], index: 0, kind: input, shape index: {}]   ;;  %s270_s1 = inlined_call_operand.hbm [shape: f32[16,128], index: 1, kind: input, shape index: {}]   ;;  %s271_s2 = inlined_call_operand.hbm [shape: f32[1,1,128], index: 2, kind: output, shape index: {}]  }
   0x1   :  { %8 = vsyncpa [#allocation7], 0 }
   0x2   :  { %9 = vsyncpa [#allocation5], 0  ;;  %s212_s9 = smov [#allocation3]   ;;  %s140_s13 = scalar_lea.hbm %s269_s0, 256 }
   0x3   :  { %s19_s10 = sshll.u32 %s212_s9, 4  ;;  %p141_p0 = scmp.ne.s32.totalorder %s269_s0, %s140_s13  ;;  %s20_s10 = int_to_ptr.vmem [resolvable:$true] %s19_s10 }
   0x4   :  { %p144_p1 = scmp.lt.u32.totalorder %s140_s13, %s269_s0 }
   0x6   :  { %p146_p2 = pnand %p144_p1, %p141_p0 }
   0x8   :  { %149 = shalt.err (!%p146_p2)
}
   0x9   :  { %s150_s18 = scalar_lea.vmem %s20_s10, 256  ;;  %p155_p4 = scmp.lt.s32.totalorder %s20_s10, %s20_s10 }
   0xa   :  { %p151_p3 = scmp.ne.s32.totalorder %s20_s10, %s150_s18  ;;  %p156_p5 = scmp.lt.s32.totalorder %s150_s18, %s150_s18 }
   0xc   :  { %p157_p6 = por %p156_p5, %p155_p4 }
   0xe   :  { %p158_p7 = pnand %p157_p6, %p151_p3 }
  0x10   :  { %161 = shalt.err (!%p158_p7)
}
  0x11   :  { %s213_s19 = smov 128   ;;  %s214_s20 = smov 8  }
  0x12   :  { %25 = dma.hbm_to_vmem [thread:$0]  %s269_s0, 256, %s20_s10, [#allocation4], %s213_s19, %s213_s19, %s214_s20  }
  0x13   :  { %s215_s23 = smov [#allocation6]   ;;  %s162_s27 = scalar_lea.hbm %s270_s1, 256 }
  0x14   :  { %s35_s24 = sshll.u32 %s215_s23, 4  ;;  %p163_p8 = scmp.ne.s32.totalorder %s270_s1, %s162_s27  ;;  %s36_s24 = int_to_ptr.vmem [resolvable:$true] %s35_s24 }
  0x15   :  { %p166_p9 = scmp.lt.u32.totalorder %s162_s27, %s270_s1 }
  0x17   :  { %p168_p10 = pnand %p166_p9, %p163_p8 }
  0x19   :  { %171 = shalt.err (!%p168_p10)
}
  0x1a   :  { %s172_s4 = scalar_lea.vmem %s36_s24, 256  ;;  %p177_p12 = scmp.lt.s32.totalorder %s36_s24, %s36_s24 }
  0x1b   :  { %p173_p11 = scmp.ne.s32.totalorder %s36_s24, %s172_s4  ;;  %p178_p13 = scmp.lt.s32.totalorder %s172_s4, %s172_s4 }
  0x1d   :  { %p179_p0 = por %p178_p13, %p177_p12 }
  0x1f   :  { %p180_p1 = pnand %p179_p0, %p173_p11 }
  0x21   :  { %183 = shalt.err (!%p180_p1)
}
  0x22   :  { %41 = dma.hbm_to_vmem [thread:$0]  %s270_s1, 256, %s36_s24, [#allocation7], %s213_s19, %s213_s19, %s214_s20  }
  0x23   :  { %206 = dma.done.wait [#allocation4], 256  }
  0x24   :  { %207 = vsyncadd [#allocation4], 4294967040 }
  0x25   :  { %208 = dma.done.wait [#allocation7], 256  }
  0x26   :  { %209 = vsyncadd [#allocation7], 4294967040  ;;  %v216_v0 = vmov 0.0   ;;  %v57_v1 = vld [vmem:[#allocation3] sm:$0xff]  ;;  %v58_v2 = vld [vmem:[#allocation3 + $0x8] sm:$0xff]  ;;  %s217_s1 = smov [#allocation8]  }
  0x27   :  { %56 = vst [vmem:[#allocation2] sm:$0x1] %v216_v0  ;;  %v67_v3 = vand.u32 2147483647, %v57_v1  ;;  %v68_v4 = vand.u32 2147483647, %v58_v2 }
  0x28   :  { %v59_v15 = vld [vmem:[#allocation6] sm:$0xff]  ;;  %v60_v16 = vld [vmem:[#allocation6 + $0x8] sm:$0xff]  ;;  %v61_v18 = vmax.f32 %v57_v1, 0.0  ;;  %v62_v22 = vmax.f32 %v58_v2, 0.0  ;;  %s116_s6 = sshll.u32 %s217_s1, 4  ;;  %s117_s6 = int_to_ptr.vmem [resolvable:$true] %s116_s6 }
  0x29   :  { %v69_v5 = vsub.f32 0.0, %v67_v3  ;;  %v70_v6 = vsub.f32 0.0, %v68_v4  ;;  %v63_v19 = vmul.f32 %v59_v15, %v57_v1  ;;  %v64_v23 = vmul.f32 %v60_v16, %v58_v2  ;;  %s184_s7 = scalar_lea.vmem %s117_s6, 16  ;;  %s188_s8 = scalar_lea.vmem %s117_s6, 32 }
  0x2a   :  { %p185_p2 = scmp.ne.s32.totalorder %s117_s6, %s184_s7  ;;  %p189_p3 = scmp.lt.s32.totalorder %s117_s6, %s117_s6 }
  0x2b   :  { %v71_v7 = vmul.f32 1.442695, %v69_v5  ;;  %v73_v8 = vmul.f32 1.442695, %v70_v6  ;;  %v65_v27 = vsub.f32 %v61_v18, %v63_v19  ;;  %v66_v30 = vsub.f32 %v62_v22, %v64_v23  ;;  %p190_p4 = scmp.lt.s32.totalorder %s188_s8, %s184_s7 }
  0x2d   :  { %132 = vpow2.f32 %v71_v7  ;;  %p191_p5 = por %p190_p4, %p189_p3 }
  0x2e   :  { %134 = vpow2.f32 %v73_v8  ;;  %v95_v43 = vld [vmem:[#allocation2] sm:$0x1] }
  0x2f   :  { %p192_p6 = pnand %p191_p5, %p185_p2 }
  0x37   :  { %v133_v9 = vpop.eup %132 }
  0x38   :  { %v135_v10 = vpop.eup %134  ;;  %v75_v11 = vadd.f32 1.0, %v133_v9  ;;  %v78_v13 = vmul.f32 -0.5, %v133_v9  ;;  %v81_v20 = vand.u32 2147483647, %v133_v9 }
  0x39   :  { %v84_v12 = vadd.f32 1.0, %v135_v10  ;;  %v87_v14 = vmul.f32 -0.5, %v135_v10  ;;  %v90_v24 = vand.u32 2147483647, %v135_v10 }
  0x3a   :  { %136 = vlog2.f32 %v75_v11  ;;  %v79_v17 = vadd.f32 1.0, %v78_v13  ;;  %vm82_vm0 = vcmp.lt.f32.partialorder %v81_v20, 0.0004427343 }
  0x3b   :  { %138 = vlog2.f32 %v84_v12  ;;  %v88_v21 = vadd.f32 1.0, %v87_v14  ;;  %vm91_vm1 = vcmp.lt.f32.partialorder %v90_v24, 0.0004427343 }
  0x3c   :  { %v80_v25 = vmul.f32 %v133_v9, %v79_v17 }
  0x3d   :  { %v89_v28 = vmul.f32 %v135_v10, %v88_v21 }
  0x44   :  { %v137_v26 = vpop.eup %136 }
  0x45   :  { %v139_v29 = vpop.eup %138  ;;  %v77_v31 = vmul.f32 0.6931472, %v137_v26 }
  0x46   :  { %v86_v32 = vmul.f32 0.6931472, %v139_v29 }
  0x47   :  { %v83_v33 = vsel %vm82_vm0, %v80_v25, %v77_v31 }
  0x48   :  { %v92_v34 = vsel %vm91_vm1, %v89_v28, %v86_v32  ;;  %v93_v35 = vadd.f32 %v83_v33, %v65_v27 }
  0x49   :  { %v94_v36 = vadd.f32 %v92_v34, %v66_v30 }
  0x4b   :  { %v96_v37 = vadd.f32 %v94_v36, %v93_v35 }
  0x4d   :  { %v97_v38 = vrot.slane %v96_v37, 4 }
  0x4f   :  { %v98_v39 = vadd.f32 %v97_v38, %v96_v37 }
  0x51   :  { %v99_v40 = vrot.slane %v98_v39, 2 }
  0x53   :  { %v100_v41 = vadd.f32 %v99_v40, %v98_v39 }
  0x55   :  { %v101_v42 = vrot.slane %v100_v41, 1 }
  0x57   :  { %v102_v44 = vadd.f32 %v101_v42, %v100_v41 }
  0x59   :  { %v103_v45 = vadd.f32 %v102_v44, %v95_v43 }
  0x5b   :  { %104 = vst [vmem:[#allocation2] sm:$0x1] %v103_v45 }
  0x62   :  { %v108_v46 = vld [vmem:[#allocation2] sm:$0x1] }
  0x63   :  { %109 = vst [vmem:[#allocation8] sm:$0x1] %v108_v46 }
  0x64   :  { %195 = shalt.err (!%p192_p6)
}
  0x65   :  { %s196_s11 = scalar_lea.hbm %s271_s2, 16 }
  0x66   :  { %p197_p7 = scmp.ne.s32.totalorder %s271_s2, %s196_s11  ;;  %p200_p8 = scmp.lt.u32.totalorder %s196_s11, %s271_s2 }
  0x68   :  { %p202_p9 = pnand %p200_p8, %p197_p7 }
  0x6a   :  { %205 = shalt.err (!%p202_p9)
}
  0x6b   :  { %119 = dma.vmem_to_hbm [thread:$0]  %s117_s6, 16, %s271_s2, [#allocation5]  }
  0x6c   :  { %210 = dma.done.wait [#allocation5], 16  }
  0x6d   :  { %211 = vsyncadd [#allocation5], 4294967280 }
  0x6e   :  { %123 = vsyncpa [#allocation4], 1 }
  0x6f   :  { %124 = vsyncpa [#allocation7], 1 }
  0x70   :  { %125 = vsyncpa [#allocation5], 1 }

</bundles_post_ra>
